<compile_context>
chip_gen: v7x
topology: tpu7x:2x2x1
jax: 0.10.0
libtpu: 0.0.40
codegen_flags: <defaults>
</compile_context>

<pallas_src>
import functools

import jax
import jax.numpy as jnp
from jax import lax
from jax.experimental import pallas as pl
from jax.experimental.pallas import tpu as pltpu

C_PAD = 128  # lane-dense logits width (classes live in lanes 0..n_class-1)


# ----------------------------------------------------------------------------
# Fused kernel: embedding-mean + pooler + prototype mean + cdist + log_softmax
# One grid step == one episode.
# ----------------------------------------------------------------------------
def protonet_kernel(x_ref, emb_ref, wt_ref, b_ref, out_ref, *,
                    n_class, n_support, n_query, seq):
    Ns = n_class * n_support
    Nq = n_class * n_query
    N = Ns + Nq
    V_pad, D = emb_ref.shape

    # --- synthetic encoder: mean token embedding as an MXU matmul ------------
    # counts[n, v] = (#occurrences of token v in row n) / seq, built with VPU
    # iota/compares; feats = counts @ emb stays entirely in VMEM/vregs.
    ids = x_ref[0]                                               # [N, seq] int32
    lane_v = lax.broadcasted_iota(jnp.int32, (N, V_pad), 1)
    counts = jnp.zeros((N, V_pad), jnp.float32)
    for s in range(seq):                                         # static unroll, seq is small
        counts = counts + (lane_v == ids[:, s:s + 1]).astype(jnp.float32)
    counts = counts * jnp.float32(1.0 / seq)                     # [N, V_pad]
    feats = jnp.dot(counts, emb_ref[...],
                    preferred_element_type=jnp.float32)          # [N, D] f32

    # --- BERT-style pooler: z = tanh(feats @ W^T + b) ------------------------
    # wt_ref is the pre-transposed weight in bf16 -> canonical (1,0) MXU
    # contraction, f32 accumulation, f32 epilogue (v5e: no bf16 VPU/EUP).
    y = jnp.dot(feats.astype(jnp.bfloat16), wt_ref[...],
                preferred_element_type=jnp.float32)
    z = jnp.tanh(y + b_ref[...])                                 # [N, D] f32

    # --- prototype mean as a small MXU matmul; avg matrix built in-register --
    r = lax.broadcasted_iota(jnp.int32, (C_PAD, N), 1)           # encoded-row index
    c = lax.broadcasted_iota(jnp.int32, (C_PAD, N), 0)           # prototype / class id
    lo = c * n_support
    in_class = (r >= lo) & (r < lo + n_support) & (r < Ns) & (c < n_class)
    avg = jnp.where(in_class, jnp.float32(1.0 / n_support), jnp.float32(0.0))
    z_proto = jnp.dot(avg, z, preferred_element_type=jnp.float32)  # [C_PAD, D]

    # --- squared-distance expansion ||q - p||^2 = qq + pp - 2 q.p (all f32) --
    zq = z[Ns:, :]                                               # [Nq, D]
    qq = jnp.sum(zq * zq, axis=1, keepdims=True)                 # [Nq, 1]

    # pp as a [1, C_PAD] row via ones-matmul: keeps the class dim on lanes.
    zp2 = z_proto * z_proto
    pp = lax.dot_general(
        jnp.ones((1, D), jnp.float32), zp2,
        dimension_numbers=(((1,), (1,)), ((), ())),
        preferred_element_type=jnp.float32)                      # [1, C_PAD]

    cross = lax.dot_general(
        zq.astype(jnp.bfloat16), z_proto.astype(jnp.bfloat16),
        dimension_numbers=(((1,), (1,)), ((), ())),
        preferred_element_type=jnp.float32)                      # [Nq, C_PAD]

    d2 = qq + pp - 2.0 * cross
    dists = jnp.sqrt(jnp.maximum(d2, 0.0))                       # Euclidean cdist

    # --- mask padded classes, numerically-stable log_softmax -----------------
    # Masked lanes carry -inf in the padded output; the wrapper slices them off.
    lane = lax.broadcasted_iota(jnp.int32, dists.shape, 1)
    neg = jnp.where(lane < n_class, -dists, -jnp.inf)
    m = jnp.max(neg, axis=1, keepdims=True)
    lse = m + jnp.log(jnp.sum(jnp.exp(neg - m), axis=1, keepdims=True))
    out_ref[0] = neg - lse                                       # [Nq, C_PAD] unmasked vst


# ----------------------------------------------------------------------------
# Wrappers
# ----------------------------------------------------------------------------
def prepare_params(params):
    """One-time parameter prep: pad vocab, transpose + bf16-cast the pooler."""
    emb = params["embedding"].astype(jnp.float32)                # [V, D]
    V, D = emb.shape
    V_pad = pl.cdiv(V, 128) * 128
    emb_pad = jnp.zeros((V_pad, D), jnp.float32).at[:V, :].set(emb)
    return {
        "emb_pad": emb_pad,                                      # [V_pad, D] f32
        "w_t": params["pooler_w"].T.astype(jnp.bfloat16),        # [D_in, D_out] bf16
        "b_row": params["pooler_b"].reshape(1, -1).astype(jnp.float32),
    }


def protonet_head_batched(prep, x_ids, n_class, n_support, n_query):
    """x_ids: [B, N, seq] int32 with N = n_class*(n_support+n_query)."""
    B, N, seq = x_ids.shape
    V_pad, D = prep["emb_pad"].shape
    Ns, Nq = n_class * n_support, n_class * n_query
    assert N == Ns + Nq
    assert n_class <= C_PAD, f"n_class={n_class} exceeds lane width {C_PAD}"

    kernel = functools.partial(protonet_kernel, n_class=n_class,
                               n_support=n_support, n_query=n_query, seq=seq)

    # One grid step per episode; weights use a constant block index so they are
    # DMA'd once.  The episode axis is "parallel" (uses both v7x TensorCores).
    # TODO(synk): at real BERT scale, additionally tile rows over N (TM=256 on
    # v6e/v7x, 128 on v5e) and gather embedding rows via scalar-prefetch /
    # manual DMA instead of holding the table in VMEM (a 30K x 768 f32 table
    # does not fit v7x's 64 MiB VMEM).
    out_pad = pl.pallas_call(
        kernel,
        out_shape=jax.ShapeDtypeStruct((B, Nq, C_PAD), jnp.float32),
        grid=(B,),
        in_specs=[
            pl.BlockSpec((1, N, seq), lambda b: (b, 0, 0)),      # token ids
            pl.BlockSpec((V_pad, D), lambda b: (0, 0)),          # embedding table
            pl.BlockSpec((D, D), lambda b: (0, 0)),              # pooler W^T (bf16)
            pl.BlockSpec((1, D), lambda b: (0, 0)),              # pooler bias
        ],
        out_specs=pl.BlockSpec((1, Nq, C_PAD), lambda b: (b, 0, 0)),
        compiler_params=pltpu.CompilerParams(
            dimension_semantics=("parallel",)),
    )(x_ids, prep["emb_pad"], prep["w_t"], prep["b_row"])

    return out_pad[:, :, :n_class]


def protonet_forward_batched(prep, xb):
    """xb = (xs, xq) with a leading batch-of-episodes axis."""
    xs, xq = xb          # [B, n_class, n_support, seq], [B, n_class, n_query, seq]
    B, n_class, n_support, seq = xs.shape
    n_query = xq.shape[2]
    x = jnp.concatenate(
        [xs.reshape(B, n_class * n_support, seq),
         xq.reshape(B, n_class * n_query, seq)], axis=1)         # [B, N, seq]
    return protonet_head_batched(prep, x, n_class, n_support, n_query)


def protonet_forward(prep, xb):
    """Single episode; matches torch ProtoNet.forward((xs, xq))."""
    xs, xq = xb
    return protonet_forward_batched(prep, (xs[None], xq[None]))[0]


# ----------------------------------------------------------------------------
# Pure-JAX reference (mirrors the kernel's mixed precision: bf16 matmul inputs,
# f32 accumulation and f32 epilogue — the TPU-recommended numerics).
# ----------------------------------------------------------------------------
def protonet_reference(params, xb):
    xs, xq = xb
    n_class, n_support, seq = xs.shape
    n_query = xq.shape[1]
    x = jnp.concatenate(
        [xs.reshape(n_class * n_support, seq), xq.reshape(n_class * n_query, seq)], 0)
    feats = jnp.mean(params["embedding"][x], axis=1)             # [N, D] f32
    w_t = params["pooler_w"].T.astype(jnp.bfloat16)
    y = jnp.dot(feats.astype(jnp.bfloat16), w_t, preferred_element_type=jnp.float32)
    z = jnp.tanh(y + params["pooler_b"])
    Ns = n_class * n_support
    z_proto = z[:Ns].reshape(n_class, n_support, -1).mean(axis=1)
    zq = z[Ns:]
    cross = jnp.dot(zq.astype(jnp.bfloat16), z_proto.astype(jnp.bfloat16).T,
                    preferred_element_type=jnp.float32)
    d2 = (jnp.sum(zq * zq, axis=1, keepdims=True)
          + jnp.sum(z_proto * z_proto, axis=1)[None, :] - 2.0 * cross)
    dists = jnp.sqrt(jnp.maximum(d2, 0.0))
    return jax.nn.log_softmax(-dists, axis=1)


if __name__ == "__main__":
    key = jax.random.PRNGKey(0)
    k_emb, k_w, k_b, k1, k2, k3, k4 = jax.random.split(key, 7)

    VOCAB, SEQ, D = 100, 8, 128
    N_CLASS, N_SUPPORT, N_QUERY = 4, 4, 4

    params = {
        "embedding": 0.02 * jax.random.normal(k_emb, (VOCAB, D), jnp.float32),
        "pooler_w": 0.05 * jax.random.normal(k_w, (D, D), jnp.float32),
        "pooler_b": 0.01 * jax.random.normal(k_b, (D,), jnp.float32),
    }
    prep = prepare_params(params)

    xs0 = jax.random.randint(k1, (N_CLASS, N_SUPPORT, SEQ), 0, VOCAB, jnp.int32)
    xq0 = jax.random.randint(k2, (N_CLASS, N_QUERY, SEQ), 0, VOCAB, jnp.int32)
    xs1 = jax.random.randint(k3, (N_CLASS, N_SUPPORT, SEQ), 0, VOCAB, jnp.int32)
    xq1 = jax.random.randint(k4, (N_CLASS, N_QUERY, SEQ), 0, VOCAB, jnp.int32)

    # --- single episode (torch ProtoNet.forward interface) -------------------
    out0 = jax.block_until_ready(protonet_forward(prep, (xs0, xq0)))
    ref0 = protonet_reference(params, (xs0, xq0))
    assert out0.shape == (N_CLASS * N_QUERY, N_CLASS)
    assert jnp.allclose(out0, ref0, atol=2e-4, rtol=2e-4), "episode 0 mismatch"

    # --- two episodes batched into ONE pallas_call (grid=(B,), parallel) -----
    outb = jax.block_until_ready(
        protonet_forward_batched(
            prep, (jnp.stack([xs0, xs1]), jnp.stack([xq0, xq1]))))
    ref1 = protonet_reference(params, (xs1, xq1))
    refb = jnp.stack([ref0, ref1])
    assert outb.shape == (2, N_CLASS * N_QUERY, N_CLASS)
    assert jnp.allclose(outb, refb, atol=2e-4, rtol=2e-4), "batched mismatch"

    print("KERNEL_OK")
</pallas_src>

<mosaic_0001>
module attributes {stable_mosaic.version = 11 : i64} {
  func.func @protonet_kernel(%arg0: i32, %arg1: memref<1x32x8xi32, #tpu.memory_space<vmem>>, %arg2: memref<128x128xf32, #tpu.memory_space<vmem>>, %arg3: memref<128x128xbf16, #tpu.memory_space<vmem>>, %arg4: memref<1x128xf32, #tpu.memory_space<vmem>>, %arg5: memref<1x16x128xf32, #tpu.memory_space<vmem>>) attributes {dimension_semantics = [#tpu.dimension_semantics<parallel>], iteration_bounds = array<i64: 1>, scalar_prefetch = 0 : i64, scratch_operands = 0 : i64, tpu.core_type = #tpu.core_type<tc>, window_params = [{transform_indices = @transform_0, window_bounds = array<i64: 1, 32, 8>}, {pipeline_mode = #tpu.pipeline_mode<synchronous>, transform_indices = @transform_1, window_bounds = array<i64: 128, 128>}, {pipeline_mode = #tpu.pipeline_mode<synchronous>, transform_indices = @transform_2, window_bounds = array<i64: 128, 128>}, {pipeline_mode = #tpu.pipeline_mode<synchronous>, transform_indices = @transform_3, window_bounds = array<i64: 1, 128>}, {transform_indices = @transform_4, window_bounds = array<i64: 1, 16, 128>}]} {
    %c0 = arith.constant 0 : index
    %c0_0 = arith.constant 0 : index
    %c0_1 = arith.constant 0 : index
    %0 = vector.load %arg1[%c0, %c0_0, %c0_1] : memref<1x32x8xi32, #tpu.memory_space<vmem>>, vector<1x32x8xi32>
    %1 = vector.shape_cast %0 : vector<1x32x8xi32> to vector<32x8xi32>
    %2 = tpu.iota {dimensions = array<i32: 1>} : vector<32x128xi32>
    %cst = arith.constant 0.000000e+00 : f32
    %3 = vector.broadcast %cst : f32 to vector<32x128xf32>
    %4 = vector.extract_strided_slice %1 {offsets = [0, 0], sizes = [32, 1], strides = [1, 1]} : vector<32x8xi32> to vector<32x1xi32>
    %5 = vector.broadcast %4 : vector<32x1xi32> to vector<32x128xi32>
    %6 = arith.cmpi eq, %2, %5 : vector<32x128xi32>
    %7 = arith.extui %6 : vector<32x128xi1> to vector<32x128xi32>
    %8 = arith.sitofp %7 : vector<32x128xi32> to vector<32x128xf32>
    %9 = arith.addf %3, %8 : vector<32x128xf32>
    %10 = vector.extract_strided_slice %1 {offsets = [0, 1], sizes = [32, 1], strides = [1, 1]} : vector<32x8xi32> to vector<32x1xi32>
    %11 = vector.broadcast %10 : vector<32x1xi32> to vector<32x128xi32>
    %12 = arith.cmpi eq, %2, %11 : vector<32x128xi32>
    %13 = arith.extui %12 : vector<32x128xi1> to vector<32x128xi32>
    %14 = arith.sitofp %13 : vector<32x128xi32> to vector<32x128xf32>
    %15 = arith.addf %9, %14 : vector<32x128xf32>
    %16 = vector.extract_strided_slice %1 {offsets = [0, 2], sizes = [32, 1], strides = [1, 1]} : vector<32x8xi32> to vector<32x1xi32>
    %17 = vector.broadcast %16 : vector<32x1xi32> to vector<32x128xi32>
    %18 = arith.cmpi eq, %2, %17 : vector<32x128xi32>
    %19 = arith.extui %18 : vector<32x128xi1> to vector<32x128xi32>
    %20 = arith.sitofp %19 : vector<32x128xi32> to vector<32x128xf32>
    %21 = arith.addf %15, %20 : vector<32x128xf32>
    %22 = vector.extract_strided_slice %1 {offsets = [0, 3], sizes = [32, 1], strides = [1, 1]} : vector<32x8xi32> to vector<32x1xi32>
    %23 = vector.broadcast %22 : vector<32x1xi32> to vector<32x128xi32>
    %24 = arith.cmpi eq, %2, %23 : vector<32x128xi32>
    %25 = arith.extui %24 : vector<32x128xi1> to vector<32x128xi32>
    %26 = arith.sitofp %25 : vector<32x128xi32> to vector<32x128xf32>
    %27 = arith.addf %21, %26 : vector<32x128xf32>
    %28 = vector.extract_strided_slice %1 {offsets = [0, 4], sizes = [32, 1], strides = [1, 1]} : vector<32x8xi32> to vector<32x1xi32>
    %29 = vector.broadcast %28 : vector<32x1xi32> to vector<32x128xi32>
    %30 = arith.cmpi eq, %2, %29 : vector<32x128xi32>
    %31 = arith.extui %30 : vector<32x128xi1> to vector<32x128xi32>
    %32 = arith.sitofp %31 : vector<32x128xi32> to vector<32x128xf32>
    %33 = arith.addf %27, %32 : vector<32x128xf32>
    %34 = vector.extract_strided_slice %1 {offsets = [0, 5], sizes = [32, 1], strides = [1, 1]} : vector<32x8xi32> to vector<32x1xi32>
    %35 = vector.broadcast %34 : vector<32x1xi32> to vector<32x128xi32>
    %36 = arith.cmpi eq, %2, %35 : vector<32x128xi32>
    %37 = arith.extui %36 : vector<32x128xi1> to vector<32x128xi32>
    %38 = arith.sitofp %37 : vector<32x128xi32> to vector<32x128xf32>
    %39 = arith.addf %33, %38 : vector<32x128xf32>
    %40 = vector.extract_strided_slice %1 {offsets = [0, 6], sizes = [32, 1], strides = [1, 1]} : vector<32x8xi32> to vector<32x1xi32>
    %41 = vector.broadcast %40 : vector<32x1xi32> to vector<32x128xi32>
    %42 = arith.cmpi eq, %2, %41 : vector<32x128xi32>
    %43 = arith.extui %42 : vector<32x128xi1> to vector<32x128xi32>
    %44 = arith.sitofp %43 : vector<32x128xi32> to vector<32x128xf32>
    %45 = arith.addf %39, %44 : vector<32x128xf32>
    %46 = vector.extract_strided_slice %1 {offsets = [0, 7], sizes = [32, 1], strides = [1, 1]} : vector<32x8xi32> to vector<32x1xi32>
    %47 = vector.broadcast %46 : vector<32x1xi32> to vector<32x128xi32>
    %48 = arith.cmpi eq, %2, %47 : vector<32x128xi32>
    %49 = arith.extui %48 : vector<32x128xi1> to vector<32x128xi32>
    %50 = arith.sitofp %49 : vector<32x128xi32> to vector<32x128xf32>
    %51 = arith.addf %45, %50 : vector<32x128xf32>
    %cst_2 = arith.constant 1.250000e-01 : f32
    %52 = vector.broadcast %cst_2 : f32 to vector<32x128xf32>
    %53 = arith.mulf %51, %52 : vector<32x128xf32>
    %c0_3 = arith.constant 0 : index
    %c0_4 = arith.constant 0 : index
    %54 = vector.load %arg2[%c0_3, %c0_4] : memref<128x128xf32, #tpu.memory_space<vmem>>, vector<128x128xf32>
    %cst_5 = arith.constant dense<0.000000e+00> : vector<32x128xf32>
    %55 = tpu.matmul %53, %54, %cst_5 {dimension_numbers = #tpu.dot_dimension_numbers<[1], [0], [0], [1], [0, 0, 1, 1], [], []>} : vector<32x128xf32>, vector<128x128xf32>, vector<32x128xf32> -> vector<32x128xf32>
    %56 = arith.truncf %55 : vector<32x128xf32> to vector<32x128xbf16>
    %c0_6 = arith.constant 0 : index
    %c0_7 = arith.constant 0 : index
    %57 = vector.load %arg3[%c0_6, %c0_7] : memref<128x128xbf16, #tpu.memory_space<vmem>>, vector<128x128xbf16>
    %cst_8 = arith.constant dense<0.000000e+00> : vector<32x128xf32>
    %58 = tpu.matmul %56, %57, %cst_8 {dimension_numbers = #tpu.dot_dimension_numbers<[1], [0], [0], [1], [0, 0, 1, 1], [], []>} : vector<32x128xbf16>, vector<128x128xbf16>, vector<32x128xf32> -> vector<32x128xf32>
    %c0_9 = arith.constant 0 : index
    %c0_10 = arith.constant 0 : index
    %59 = vector.load %arg4[%c0_9, %c0_10] : memref<1x128xf32, #tpu.memory_space<vmem>>, vector<1x128xf32>
    %60 = vector.broadcast %59 : vector<1x128xf32> to vector<32x128xf32>
    %61 = arith.addf %58, %60 : vector<32x128xf32>
    %62 = math.tanh %61 : vector<32x128xf32>
    %63 = tpu.iota {dimensions = array<i32: 1>} : vector<128x32xi32>
    %64 = tpu.iota {dimensions = array<i32: 0>} : vector<128x32xi32>
    %c4_i32 = arith.constant 4 : i32
    %65 = vector.broadcast %c4_i32 : i32 to vector<128x32xi32>
    %66 = arith.muli %64, %65 : vector<128x32xi32>
    %67 = arith.cmpi sge, %63, %66 : vector<128x32xi32>
    %c4_i32_11 = arith.constant 4 : i32
    %68 = vector.broadcast %c4_i32_11 : i32 to vector<128x32xi32>
    %69 = arith.addi %66, %68 : vector<128x32xi32>
    %70 = arith.cmpi slt, %63, %69 : vector<128x32xi32>
    %71 = arith.andi %67, %70 : vector<128x32xi1>
    %c16_i32 = arith.constant 16 : i32
    %72 = vector.broadcast %c16_i32 : i32 to vector<128x32xi32>
    %73 = arith.cmpi slt, %63, %72 : vector<128x32xi32>
    %74 = arith.andi %71, %73 : vector<128x32xi1>
    %c4_i32_12 = arith.constant 4 : i32
    %75 = vector.broadcast %c4_i32_12 : i32 to vector<128x32xi32>
    %76 = arith.cmpi slt, %64, %75 : vector<128x32xi32>
    %77 = arith.andi %74, %76 : vector<128x32xi1>
    %cst_13 = arith.constant 2.500000e-01 : f32
    %cst_14 = arith.constant 0.000000e+00 : f32
    %78 = vector.broadcast %cst_13 : f32 to vector<128x32xf32>
    %79 = vector.broadcast %cst_14 : f32 to vector<128x32xf32>
    %80 = arith.select %77, %78, %79 : vector<128x32xi1>, vector<128x32xf32>
    %cst_15 = arith.constant dense<0.000000e+00> : vector<128x128xf32>
    %81 = tpu.matmul %80, %62, %cst_15 {dimension_numbers = #tpu.dot_dimension_numbers<[1], [0], [0], [1], [0, 0, 1, 1], [], []>} : vector<128x32xf32>, vector<32x128xf32>, vector<128x128xf32> -> vector<128x128xf32>
    %82 = vector.extract_strided_slice %62 {offsets = [16, 0], sizes = [16, 128], strides = [1, 1]} : vector<32x128xf32> to vector<16x128xf32>
    %83 = arith.mulf %82, %82 : vector<16x128xf32>
    %cst_16 = arith.constant dense<0.000000e+00> : vector<16xf32>
    %84 = vector.multi_reduction <add>, %83, %cst_16 [1] : vector<16x128xf32> to vector<16xf32>
    %85 = vector.shape_cast %84 : vector<16xf32> to vector<16x1xf32>
    %86 = arith.mulf %81, %81 : vector<128x128xf32>
    %cst_17 = arith.constant 1.000000e+00 : f32
    %87 = vector.broadcast %cst_17 : f32 to vector<1x128xf32>
    %cst_18 = arith.constant dense<0.000000e+00> : vector<1x128xf32>
    %88 = tpu.matmul %87, %86, %cst_18 {dimension_numbers = #tpu.dot_dimension_numbers<[1], [1], [0], [0], [0, 0, 1, 0], [], []>} : vector<1x128xf32>, vector<128x128xf32>, vector<1x128xf32> -> vector<1x128xf32>
    %89 = arith.truncf %82 : vector<16x128xf32> to vector<16x128xbf16>
    %90 = arith.truncf %81 : vector<128x128xf32> to vector<128x128xbf16>
    %cst_19 = arith.constant dense<0.000000e+00> : vector<16x128xf32>
    %91 = tpu.matmul %89, %90, %cst_19 {dimension_numbers = #tpu.dot_dimension_numbers<[1], [1], [0], [0], [0, 0, 1, 0], [], []>} : vector<16x128xbf16>, vector<128x128xbf16>, vector<16x128xf32> -> vector<16x128xf32>
    %92 = vector.broadcast %85 : vector<16x1xf32> to vector<16x128xf32>
    %93 = vector.broadcast %88 : vector<1x128xf32> to vector<16x128xf32>
    %94 = arith.addf %92, %93 : vector<16x128xf32>
    %cst_20 = arith.constant 2.000000e+00 : f32
    %95 = vector.broadcast %cst_20 : f32 to vector<16x128xf32>
    %96 = arith.mulf %95, %91 : vector<16x128xf32>
    %97 = arith.subf %94, %96 : vector<16x128xf32>
    %cst_21 = arith.constant 0.000000e+00 : f32
    %98 = vector.broadcast %cst_21 : f32 to vector<16x128xf32>
    %99 = arith.maximumf %97, %98 : vector<16x128xf32>
    %100 = math.sqrt %99 : vector<16x128xf32>
    %101 = tpu.iota {dimensions = array<i32: 1>} : vector<16x128xi32>
    %c4_i32_22 = arith.constant 4 : i32
    %102 = vector.broadcast %c4_i32_22 : i32 to vector<16x128xi32>
    %103 = arith.cmpi slt, %101, %102 : vector<16x128xi32>
    %cst_23 = arith.constant 0.000000e+00 : f32
    %104 = vector.broadcast %cst_23 : f32 to vector<16x128xf32>
    %105 = arith.subf %104, %100 : vector<16x128xf32>
    %cst_24 = arith.constant 0xFF800000 : f32
    %106 = vector.broadcast %cst_24 : f32 to vector<16x128xf32>
    %107 = arith.select %103, %105, %106 : vector<16x128xi1>, vector<16x128xf32>
    %cst_25 = arith.constant dense<0xFF800000> : vector<16xf32>
    %108 = vector.multi_reduction <maximumf>, %107, %cst_25 [1] : vector<16x128xf32> to vector<16xf32>
    %109 = vector.shape_cast %108 : vector<16xf32> to vector<16x1xf32>
    %110 = vector.broadcast %109 : vector<16x1xf32> to vector<16x128xf32>
    %111 = arith.subf %107, %110 : vector<16x128xf32>
    %112 = math.exp %111 : vector<16x128xf32>
    %cst_26 = arith.constant dense<0.000000e+00> : vector<16xf32>
    %113 = vector.multi_reduction <add>, %112, %cst_26 [1] : vector<16x128xf32> to vector<16xf32>
    %114 = vector.shape_cast %113 : vector<16xf32> to vector<16x1xf32>
    %115 = math.log %114 : vector<16x1xf32>
    %116 = arith.addf %109, %115 : vector<16x1xf32>
    %117 = vector.broadcast %116 : vector<16x1xf32> to vector<16x128xf32>
    %118 = arith.subf %107, %117 : vector<16x128xf32>
    %c0_27 = arith.constant 0 : index
    %c0_28 = arith.constant 0 : index
    %c0_29 = arith.constant 0 : index
    %119 = vector.load %arg5[%c0_27, %c0_28, %c0_29] : memref<1x16x128xf32, #tpu.memory_space<vmem>>, vector<1x16x128xf32>
    %120 = vector.shape_cast %119 : vector<1x16x128xf32> to vector<16x128xf32>
    %121 = vector.shape_cast %118 : vector<16x128xf32> to vector<1x16x128xf32>
    tpu.vector_store %arg5[%c0_27, %c0_28, %c0_29], %121 {strides = array<i32>} : memref<1x16x128xf32, #tpu.memory_space<vmem>>, vector<1x16x128xf32>,
    return
  }
  func.func @transform_0(%arg0: i32) -> (i32, i32, i32) {
    %c0_i32 = arith.constant 0 : i32
    %c0_i32_0 = arith.constant 0 : i32
    %c0_i32_1 = arith.constant 0 : i32
    return %arg0, %c0_i32, %c0_i32_0 : i32, i32, i32
  }
  func.func @transform_1(%arg0: i32) -> (i32, i32) {
    %c0_i32 = arith.constant 0 : i32
    %c0_i32_0 = arith.constant 0 : i32
    %c0_i32_1 = arith.constant 0 : i32
    return %c0_i32, %c0_i32_0 : i32, i32
  }
  func.func @transform_2(%arg0: i32) -> (i32, i32) {
    %c0_i32 = arith.constant 0 : i32
    %c0_i32_0 = arith.constant 0 : i32
    %c0_i32_1 = arith.constant 0 : i32
    return %c0_i32, %c0_i32_0 : i32, i32
  }
  func.func @transform_3(%arg0: i32) -> (i32, i32) {
    %c0_i32 = arith.constant 0 : i32
    %c0_i32_0 = arith.constant 0 : i32
    %c0_i32_1 = arith.constant 0 : i32
    return %c0_i32, %c0_i32_0 : i32, i32
  }
  func.func @transform_4(%arg0: i32) -> (i32, i32, i32) {
    %c0_i32 = arith.constant 0 : i32
    %c0_i32_0 = arith.constant 0 : i32
    %c0_i32_1 = arith.constant 0 : i32
    return %arg0, %c0_i32, %c0_i32_0 : i32, i32, i32
  }
}

</mosaic_0001>

<bundles_post_ra>
// kernel: tpu_custom_call.1
= control target key start
LH: loop header
LB: loop body
LE: loop exit
PB: predicated region body
PF: predicated region fallthrough
CT: control target
= control target key end

     0   :  { %9 = vsyncpa [#allocation3], 0  ;;  %s1842_s0 = inlined_call_operand.vmem [shape: s32[1,32,8], index: 0, kind: input, shape index: {}]   ;;  %s1843_s1 = inlined_call_operand.hbm [shape: f32[128,128], index: 1, kind: input, shape index: {}]   ;;  %s1844_s2 = inlined_call_operand.hbm [shape: bf16[128,128], index: 2, kind: input, shape index: {}]   ;;  %s1845_s3 = inlined_call_operand.vmem [shape: f32[1,128], index: 3, kind: input, shape index: {}]   ;;  %s1846_s4 = inlined_call_operand.hbm [shape: f32[1,16,128], index: 4, kind: output, shape index: {}]  }
   0x1   :  { %10 = vsyncpa [#allocation6], 0 }
   0x2   :  { %11 = vsyncpa [#allocation4], 0  ;;  %s1551_s15 = smov [#allocation2]   ;;  %s1479_s19 = scalar_lea.hbm %s1843_s1, 2048 }
   0x3   :  { %s19_s16 = sshll.u32 %s1551_s15, 4  ;;  %p1480_p0 = scmp.ne.s32.totalorder %s1843_s1, %s1479_s19  ;;  %s20_s16 = int_to_ptr.vmem [resolvable:$true] %s19_s16 }
   0x4   :  { %p1483_p1 = scmp.lt.u32.totalorder %s1479_s19, %s1843_s1 }
   0x6   :  { %p1485_p2 = pnand %p1483_p1, %p1480_p0 }
   0x8   :  { %1488 = shalt.err (!%p1485_p2)
}
   0x9   :  { %s1489_s24 = scalar_lea.vmem %s20_s16, 2048  ;;  %p1494_p4 = scmp.lt.s32.totalorder %s20_s16, %s20_s16 }
   0xa   :  { %p1490_p3 = scmp.ne.s32.totalorder %s20_s16, %s1489_s24  ;;  %p1495_p5 = scmp.lt.s32.totalorder %s1489_s24, %s1489_s24 }
   0xc   :  { %p1496_p6 = por %p1495_p5, %p1494_p4 }
   0xe   :  { %p1497_p7 = pnand %p1496_p6, %p1490_p3 }
  0x10   :  { %1500 = shalt.err (!%p1497_p7)
}
  0x11   :  { %s1552_s25 = smov 128   ;;  %s1553_s26 = smov 8  }
  0x12   :  { %25 = dma.hbm_to_vmem [thread:$0]  %s1843_s1, 2048, %s20_s16, [#allocation3], %s1552_s25, %s1552_s25, %s1553_s26  }
  0x13   :  { %s1554_s29 = smov [#allocation5]   ;;  %s1501_s7 = scalar_lea.hbm %s1844_s2, 1024 }
  0x14   :  { %s31_s30 = sshll.u32 %s1554_s29, 4  ;;  %p1502_p8 = scmp.ne.s32.totalorder %s1844_s2, %s1501_s7  ;;  %s32_s30 = int_to_ptr.vmem [resolvable:$true] %s31_s30 }
  0x15   :  { %p1505_p9 = scmp.lt.u32.totalorder %s1501_s7, %s1844_s2 }
  0x17   :  { %p1507_p10 = pnand %p1505_p9, %p1502_p8 }
  0x19   :  { %1510 = shalt.err (!%p1507_p10)
}
  0x1a   :  { %s1511_s12 = scalar_lea.vmem %s32_s30, 1024  ;;  %p1516_p12 = scmp.lt.s32.totalorder %s32_s30, %s32_s30 }
  0x1b   :  { %p1512_p11 = scmp.ne.s32.totalorder %s32_s30, %s1511_s12  ;;  %p1517_p13 = scmp.lt.s32.totalorder %s1511_s12, %s1511_s12 }
  0x1d   :  { %p1518_p0 = por %p1517_p13, %p1516_p12 }
  0x1f   :  { %p1519_p1 = pnand %p1518_p0, %p1512_p11 }
  0x21   :  { %1522 = shalt.err (!%p1519_p1)
}
  0x22   :  { %s1555_s1 = smov 64   ;;  %s1556_s13 = smov 4  }
  0x23   :  { %37 = dma.hbm_to_vmem [thread:$0]  %s1844_s2, 1024, %s32_s30, [#allocation6], %s1555_s1, %s1555_s1, %s1556_s13  }
  0x24   :  { %1545 = dma.done.wait [#allocation3], 2048  }
  0x25   :  { %1546 = vsyncadd [#allocation3], 4294965248 }
  0x26   :  { %1547 = dma.done.wait [#allocation6], 1024  }
  0x27   :  { %1548 = vsyncadd [#allocation6], 4294966272  ;;  %v1557_v0 = vmov 0   ;;  %v1625_v1 = vld [vmem:[%s1842_s0 + $0x8] sm:$0xff]  ;;  %v1630_v2 = vld [vmem:[%s1842_s0] sm:$0xff]  ;;  %v1558_v3 = vmov 1   ;;  %v51_v57 = vlaneseq }
  0x28   :  { %1427 = vset.pattern.permute.xlu1 %v1557_v0  ;;  %1425 = vset.pattern.permute.xlu0 %v1557_v0  ;;  %v1559_v4 = vmov 2   ;;  %v1641_v5 = vld [vmem:[%s1842_s0 + $0x10] sm:$0xff]  ;;  %v1560_v6 = vmov 3   ;;  %v1650_v7 = vld [vmem:[%s1842_s0 + $0x18] sm:$0xff]  ;;  %v1561_v8 = vmov 5   ;;  %v1562_v9 = vmov 4  }
  0x29   :  { %57 = vperm.xlu1 %1427, %v1625_v1   ;;  %54 = vperm.xlu0 %1425, %v1630_v2   ;;  %v1563_v10 = vmov 7   ;;  %v1564_v11 = vmov 6   ;;  %v281_v12 = vld [vmem:[#allocation2] sm:$0xff]  ;;  %v282_v13 = vld [vmem:[#allocation2 + $0x8] sm:$0xff]  ;;  %v283_v15 = vld [vmem:[#allocation2 + $0x10] sm:$0xff]  ;;  %v1565_v36 = vmov 0.0  }
  0x2a   :  { %v1342_v14 = vpack.c.bf16 %v282_v13, %v281_v12  ;;  %v284_v16 = vld [vmem:[#allocation2 + $0x18] sm:$0xff]  ;;  %v285_v18 = vld [vmem:[#allocation2 + $0x20] sm:$0xff]  ;;  %v286_v19 = vld [vmem:[#allocation2 + $0x28] sm:$0xff]  ;;  %v1696_v60 = vand.u32 127, %v51_v57 }
  0x2b   :  { %v1346_v17 = vpack.c.bf16 %v284_v16, %v283_v15  ;;  %v1350_v20 = vpack.c.bf16 %v286_v19, %v285_v18  ;;  %v287_v21 = vld [vmem:[#allocation2 + $0x30] sm:$0xff]  ;;  %v288_v22 = vld [vmem:[#allocation2 + $0x38] sm:$0xff]  ;;  %v289_v24 = vld [vmem:[#allocation2 + $0x40] sm:$0xff] }
  0x2c   :  { %1343 = vmatprep.subr.bf16.mxu0 %v1342_v14  ;;  %v1354_v23 = vpack.c.bf16 %v288_v22, %v287_v21  ;;  %v290_v25 = vld [vmem:[#allocation2 + $0x48] sm:$0xff]  ;;  %v291_v27 = vld [vmem:[#allocation2 + $0x50] sm:$0xff]  ;;  %v292_v28 = vld [vmem:[#allocation2 + $0x58] sm:$0xff] }
  0x2d   :  { %1428 = vset.pattern.permute.xlu1 %v1558_v3  ;;  %1426 = vset.pattern.permute.xlu0 %v1558_v3  ;;  %v1358_v26 = vpack.c.bf16 %v290_v25, %v289_v24  ;;  %v1362_v29 = vpack.c.bf16 %v292_v28, %v291_v27  ;;  %v293_v30 = vld [vmem:[#allocation2 + $0x60] sm:$0xff]  ;;  %v294_v31 = vld [vmem:[#allocation2 + $0x68] sm:$0xff]  ;;  %v295_v33 = vld [vmem:[#allocation2 + $0x70] sm:$0xff] }
  0x2e   :  { %85 = vperm.xlu1 %1428, %v1625_v1   ;;  %82 = vperm.xlu0 %1426, %v1630_v2   ;;  %v1366_v32 = vpack.c.bf16 %v294_v31, %v293_v30  ;;  %v296_v34 = vld [vmem:[#allocation2 + $0x78] sm:$0xff]  ;;  %v1451_v37 = vld [vmem:[#allocation5] sm:$0xff]   ;;  %v1452_v38 = vld [vmem:[#allocation5 + $0x8] sm:$0xff]  }
  0x2f   :  { %1345 = vmatpush3.bf16.msra.mxu0 %v1342_v14  ;;  %v1370_v35 = vpack.c.bf16 %v296_v34, %v295_v33  ;;  %1235 = vmatprep.subr.bf16.mxu1 %v1451_v37  ;;  %v1453_v39 = vld [vmem:[#allocation5 + $0x10] sm:$0xff]   ;;  %v1454_v40 = vld [vmem:[#allocation5 + $0x18] sm:$0xff]   ;;  %v1455_v41 = vld [vmem:[#allocation5 + $0x20] sm:$0xff]  }
  0x30   :  { %1347 = vmatprep.subr.bf16.mxu0 %v1346_v17  ;;  %1236 = vmatpush3.bf16.msra.mxu1 %v1451_v37 }
  0x31   :  { %1237 = vmatprep.subr.bf16.mxu1 %v1452_v38 }
  0x32   :  { %1429 = vset.pattern.permute.xlu1 %v1559_v4  ;;  %1430 = vset.pattern.permute.xlu0 %v1559_v4 }
  0x33   :  { %110 = vperm.xlu1 %1429, %v1630_v2   ;;  %113 = vperm.xlu0 %1430, %v1625_v1  }
  0x34   :  { %1349 = vmatpush3.bf16.msra.mxu0 %v1346_v17  ;;  %1238 = vmatpush3.bf16.msra.mxu1 %v1452_v38 }
  0x35   :  { %1351 = vmatprep.subr.bf16.mxu0 %v1350_v20  ;;  %1239 = vmatprep.subr.bf16.mxu1 %v1453_v39 }
  0x37   :  { %1431 = vset.pattern.permute.xlu1 %v1557_v0  ;;  %1433 = vset.pattern.permute.xlu0 %v1560_v6 }
  0x38   :  { %60 = vperm.xlu1 %1431, %v1641_v5   ;;  %138 = vperm.xlu0 %1433, %v1630_v2  }
  0x39   :  { %1353 = vmatpush3.bf16.msra.mxu0 %v1350_v20  ;;  %1240 = vmatpush3.bf16.msra.mxu1 %v1453_v39 }
  0x3a   :  { %1355 = vmatprep.subr.bf16.mxu0 %v1354_v23  ;;  %1241 = vmatprep.subr.bf16.mxu1 %v1454_v40 }
  0x3c   :  { %1432 = vset.pattern.permute.xlu1 %v1558_v3  ;;  %141 = vperm.xlu0 %1433, %v1625_v1  }
  0x3d   :  { %88 = vperm.xlu1 %1432, %v1641_v5   ;;  %1357 = vmatpush3.bf16.msra.mxu0 %v1354_v23 }
  0x3e   :  { %1359 = vmatprep.subr.bf16.mxu0 %v1358_v26  ;;  %1242 = vmatpush3.bf16.msra.mxu1 %v1454_v40 }
  0x3f   :  { %1243 = vmatprep.subr.bf16.mxu1 %v1455_v41 }
  0x40   :  { %144 = vperm.xlu0 %1433, %v1641_v5  }
  0x41   :  { %1434 = vset.pattern.permute.xlu1 %v1557_v0  ;;  %1361 = vmatpush3.bf16.msra.mxu0 %v1358_v26 }
  0x42   :  { %63 = vperm.xlu1 %1434, %v1650_v7   ;;  %1363 = vmatprep.subr.bf16.mxu0 %v1362_v29 }
  0x43   :  { %1244 = vmatpush3.bf16.msra.mxu1 %v1455_v41 }
  0x44   :  { %1440 = vset.pattern.permute.xlu0 %v1561_v8 }
  0x45   :  { %197 = vperm.xlu0 %1440, %v1625_v1   ;;  %1365 = vmatpush3.bf16.msra.mxu0 %v1362_v29 }
  0x46   :  { %1435 = vset.pattern.permute.xlu1 %v1558_v3  ;;  %1367 = vmatprep.subr.bf16.mxu0 %v1366_v32 }
  0x47   :  { %91 = vperm.xlu1 %1435, %v1650_v7  }
  0x49   :  { %1441 = vset.pattern.permute.xlu0 %v1562_v9  ;;  %1369 = vmatpush3.bf16.msra.mxu0 %v1366_v32 }
  0x4a   :  { %166 = vperm.xlu0 %1441, %v1630_v2   ;;  %1371 = vmatprep.subr.bf16.mxu0 %v1370_v35 }
  0x4b   :  { %1436 = vset.pattern.permute.xlu1 %v1559_v4 }
  0x4c   :  { %116 = vperm.xlu1 %1436, %v1641_v5  }
  0x4d   :  { %1373 = vmatpush3.bf16.msra.mxu0 %v1370_v35 }
  0x4e   :  { %175 = vperm.xlu0 %1441, %v1650_v7   ;;  %1322 = vmatprep.subr.bf16.mxu0 %v1565_v36 }
  0x50   :  { %119 = vperm.xlu1 %1436, %v1650_v7  }
  0x52   :  { %1445 = vset.pattern.permute.xlu0 %v1563_v10 }
  0x53   :  { %250 = vperm.xlu0 %1445, %v1630_v2  }
  0x54   :  { %1437 = vset.pattern.permute.xlu1 %v1562_v9 }
  0x55   :  { %169 = vperm.xlu1 %1437, %v1625_v1  }
  0x57   :  { %1447 = vset.pattern.permute.xlu0 %v1564_v11 }
  0x58   :  { %228 = vperm.xlu0 %1447, %v1641_v5  }
  0x59   :  { %1438 = vset.pattern.permute.xlu1 %v1561_v8 }
  0x5a   :  { %194 = vperm.xlu1 %1438, %v1630_v2  }
  0x5c   :  { %1450 = vset.pattern.permute.xlu0 %v1563_v10 }
  0x5d   :  { %259 = vperm.xlu0 %1450, %v1650_v7  }
  0x5e   :  { %1439 = vset.pattern.permute.xlu1 %v1560_v6 }
  0x5f   :  { %147 = vperm.xlu1 %1439, %v1650_v7  }
  0x63   :  { %1442 = vset.pattern.permute.xlu1 %v1562_v9 }
  0x64   :  { %172 = vperm.xlu1 %1442, %v1641_v5  }
  0x68   :  { %1443 = vset.pattern.permute.xlu1 %v1564_v11 }
  0x69   :  { %222 = vperm.xlu1 %1443, %v1630_v2  }
  0x6d   :  { %225 = vperm.xlu1 %1443, %v1625_v1  }
  0x71   :  { %1444 = vset.pattern.permute.xlu1 %v1561_v8 }
  0x72   :  { %200 = vperm.xlu1 %1444, %v1641_v5  }
  0x76   :  { %203 = vperm.xlu1 %1444, %v1650_v7  }
  0x7a   :  { %1446 = vset.pattern.permute.xlu1 %v1563_v10 }
  0x7b   :  { %253 = vperm.xlu1 %1446, %v1625_v1  }
  0x7f   :  { %1448 = vset.pattern.permute.xlu1 %v1564_v11 }
  0x80   :  { %231 = vperm.xlu1 %1448, %v1650_v7  }
  0x84   :  { %1449 = vset.pattern.permute.xlu1 %v1563_v10 }
  0x85   :  { %256 = vperm.xlu1 %1449, %v1641_v5  }
  0xa8   :  { %v58_v42 = vpop.permute.xlu1 %57  ;;  %v55_v45 = vpop.permute.xlu0 %54 }
  0xa9   :  { %vm65_vm0 = vcmp.eq.s32.totalorder %v1696_v60, %v55_v45  ;;  %vm66_vm9 = vcmp.eq.s32.totalorder %v1696_v60, %v58_v42 }
  0xaa   :  { %v1079_v62 = vsel %vm65_vm0, 1.0, %v1565_v36  ;;  %v1080_v21 = vsel %vm66_vm9, 1.0, %v1565_v36 }
  0xad   :  { %v86_v43 = vpop.permute.xlu1 %85  ;;  %v83_v47 = vpop.permute.xlu0 %82 }
  0xae   :  { %vm93_vm1 = vcmp.eq.s32.totalorder %v1696_v60, %v83_v47  ;;  %vm94_vm7 = vcmp.eq.s32.totalorder %v1696_v60, %v86_v43 }
  0xaf   :  { %v1083_v63 = vsel %vm93_vm1, 1.0, %v1565_v36  ;;  %v1084_v18 = vsel %vm94_vm7, 1.0, %v1565_v36 }
  0xb0   :  { %v105_v2 = vadd.f32 %v1083_v63, %v1079_v62  ;;  %v106_v23 = vadd.f32 %v1084_v18, %v1080_v21 }
  0xb2   :  { %v111_v44 = vpop.permute.xlu1 %110  ;;  %v114_v49 = vpop.permute.xlu0 %113 }
  0xb3   :  { %vm121_vm2 = vcmp.eq.s32.totalorder %v1696_v60, %v111_v44  ;;  %vm122_vm10 = vcmp.eq.s32.totalorder %v1696_v60, %v114_v49 }
  0xb4   :  { %v1087_v3 = vsel %vm121_vm2, 1.0, %v1565_v36  ;;  %v1088_v22 = vsel %vm122_vm10, 1.0, %v1565_v36 }
  0xb5   :  { %v133_v6 = vadd.f32 %v1087_v3, %v105_v2  ;;  %v134_v26 = vadd.f32 %v1088_v22, %v106_v23 }
  0xb7   :  { %v1679_v46 = vpop.permute.xlu1 %60  ;;  %v139_v51 = vpop.permute.xlu0 %138 }
  0xb8   :  { %vm149_vm3 = vcmp.eq.s32.totalorder %v1696_v60, %v139_v51  ;;  %vm67_vm15 = vcmp.eq.s32.totalorder %v1696_v60, %v1679_v46 }
  0xb9   :  { %v1091_v5 = vsel %vm149_vm3, 1.0, %v1565_v36  ;;  %v1081_v37 = vsel %vm67_vm15, 1.0, %v1565_v36 }
  0xba   :  { %v161_v10 = vadd.f32 %v1091_v5, %v133_v6 }
  0xbb   :  { %v142_v54 = vpop.permute.xlu0 %141 }
  0xbc   :  { %v1681_v48 = vpop.permute.xlu1 %88  ;;  %vm150_vm11 = vcmp.eq.s32.totalorder %v1696_v60, %v142_v54 }
  0xbd   :  { %v1092_v25 = vsel %vm150_vm11, 1.0, %v1565_v36  ;;  %vm95_vm14 = vcmp.eq.s32.totalorder %v1696_v60, %v1681_v48 }
  0xbe   :  { %v162_v29 = vadd.f32 %v1092_v25, %v134_v26  ;;  %v1085_v31 = vsel %vm95_vm14, 1.0, %v1565_v36 }
  0xbf   :  { %v1691_v56 = vpop.permute.xlu0 %144  ;;  %v107_v41 = vadd.f32 %v1085_v31, %v1081_v37 }
  0xc1   :  { %v1683_v50 = vpop.permute.xlu1 %63 }
  0xc2   :  { %vm68_vm0 = vcmp.eq.s32.totalorder %v1696_v60, %v1683_v50 }
  0xc3   :  { %v1082_v32 = vsel %vm68_vm0, 1.0, %v1565_v36 }
  0xc4   :  { %v1693_v59 = vpop.permute.xlu0 %197 }
  0xc5   :  { %vm206_vm2 = vcmp.eq.s32.totalorder %v1696_v60, %v1693_v59 }
  0xc6   :  { %v1685_v52 = vpop.permute.xlu1 %91  ;;  %v1100_v38 = vsel %vm206_vm2, 1.0, %v1565_v36 }
  0xc7   :  { %vm96_vm13 = vcmp.eq.s32.totalorder %v1696_v60, %v1685_v52 }
  0xc8   :  { %v1086_v30 = vsel %vm96_vm13, 1.0, %v1565_v36 }
  0xc9   :  { %v167_v0 = vpop.permute.xlu0 %166  ;;  %v108_v39 = vadd.f32 %v1086_v30, %v1082_v32 }
  0xca   :  { %vm177_vm4 = vcmp.eq.s32.totalorder %v1696_v60, %v167_v0 }
  0xcb   :  { %v1687_v53 = vpop.permute.xlu1 %116  ;;  %v1095_v8 = vsel %vm177_vm4, 1.0, %v1565_v36 }
  0xcc   :  { %v189_v12 = vadd.f32 %v1095_v8, %v161_v10  ;;  %vm123_vm3 = vcmp.eq.s32.totalorder %v1696_v60, %v1687_v53 }
  0xcd   :  { %v1705_v4 = vpop.permute.xlu0 %175  ;;  %v1089_v40 = vsel %vm123_vm3, 1.0, %v1565_v36  ;;  %vm605_vm3 = vcmp.lt.s32.totalorder %v1696_v60, 16 }
  0xce   :  { %vm180_vm7 = vcmp.eq.s32.totalorder %v1696_v60, %v1705_v4  ;;  %v135_v45 = vadd.f32 %v1089_v40, %v107_v41 }
  0xcf   :  { %v1689_v55 = vpop.permute.xlu1 %119  ;;  %v1098_v51 = vsel %vm180_vm7, 1.0, %v1565_v36  ;;  %vm670_vm7 = vcmask 261120  }
  0xd0   :  { %vm124_vm1 = vcmp.eq.s32.totalorder %v1696_v60, %v1689_v55 }
  0xd1   :  { %v1090_v33 = vsel %vm124_vm1, 1.0, %v1565_v36 }
  0xd2   :  { %v251_v9 = vpop.permute.xlu0 %250  ;;  %v136_v43 = vadd.f32 %v1090_v33, %v108_v39 }
  0xd3   :  { %vm261_vm6 = vcmp.eq.s32.totalorder %v1696_v60, %v251_v9 }
  0xd4   :  { %v170_v58 = vpop.permute.xlu1 %169  ;;  %v1107_v16 = vsel %vm261_vm6, 1.0, %v1565_v36  ;;  %vm151_vm6 = vcmp.eq.s32.totalorder %v1696_v60, %v1691_v56 }
  0xd5   :  { %vm178_vm12 = vcmp.eq.s32.totalorder %v1696_v60, %v170_v58  ;;  %v1093_v48 = vsel %vm151_vm6, 1.0, %v1565_v36 }
  0xd6   :  { %v1096_v28 = vsel %vm178_vm12, 1.0, %v1565_v36  ;;  %v163_v55 = vadd.f32 %v1093_v48, %v135_v45  ;;  %v1566_v45 = vmov 0.0|0.0  }
  0xd7   :  { %v190_v34 = vadd.f32 %v1096_v28, %v162_v29  ;;  %v229_v47 = vpop.permute.xlu0 %228 }
  0xd8   :  { %vm235_vm12 = vcmp.eq.s32.totalorder %v1696_v60, %v229_v47 }
  0xd9   :  { %v195_v61 = vpop.permute.xlu1 %194  ;;  %v218_v46 = vadd.f32 %v1100_v38, %v190_v34  ;;  %v1105_v5 = vsel %vm235_vm12, 1.0, %v1565_v36  ;;  %vm1032_vm12 = vcmp.lt.s32.totalorder %v1696_v60, 4 }
  0xda   :  { %vm205_vm5 = vcmp.eq.s32.totalorder %v1696_v60, %v195_v61 }
  0xdb   :  { %v1099_v11 = vsel %vm205_vm5, 1.0, %v1565_v36 }
  0xdc   :  { %v217_v14 = vadd.f32 %v1099_v11, %v189_v12  ;;  %v260_v59 = vpop.permute.xlu0 %259 }
  0xdd   :  { %vm264_vm14 = vcmp.eq.s32.totalorder %v1696_v60, %v260_v59 }
  0xde   :  { %v148_v1 = vpop.permute.xlu1 %147 }
  0xdf   :  { %vm152_vm4 = vcmp.eq.s32.totalorder %v1696_v60, %v148_v1 }
  0xe0   :  { %v1094_v42 = vsel %vm152_vm4, 1.0, %v1565_v36 }
  0xe1   :  { %v164_v49 = vadd.f32 %v1094_v42, %v136_v43 }
  0xe3   :  { %v1710_v7 = vpop.permute.xlu1 %172  ;;  %v192_v61 = vadd.f32 %v1098_v51, %v164_v49 }
  0xe8   :  { %v223_v13 = vpop.permute.xlu1 %222 }
  0xe9   :  { %vm233_vm8 = vcmp.eq.s32.totalorder %v1696_v60, %v223_v13 }
  0xea   :  { %v1103_v15 = vsel %vm233_vm8, 1.0, %v1565_v36  ;;  %vm179_vm8 = vcmp.eq.s32.totalorder %v1696_v60, %v1710_v7  ;;  %v1110_v7 = vsel %vm264_vm14, 1.0, %v1565_v36 }
  0xeb   :  { %v245_v17 = vadd.f32 %v1103_v15, %v217_v14  ;;  %v1097_v53 = vsel %vm179_vm8, 1.0, %v1565_v36  ;;  %v1456_v15 = vld [vmem:[#allocation5 + $0x28] sm:$0xff]   ;;  %vm1567_vm8 = vmmov 0  }
  0xec   :  { %v226_v19 = vpop.permute.xlu1 %225  ;;  %v191_v63 = vadd.f32 %v1097_v53, %v163_v55  ;;  %1245 = vmatprep.subr.bf16.mxu1 %v1456_v15 }
  0xed   :  { %v273_v20 = vadd.f32 %v1107_v16, %v245_v17  ;;  %vm234_vm5 = vcmp.eq.s32.totalorder %v1696_v60, %v226_v19  ;;  %1246 = vmatpush3.bf16.msra.mxu1 %v1456_v15  ;;  %v1457_v16 = vld [vmem:[#allocation5 + $0x30] sm:$0xff]   ;;  %v1458_v17 = vld [vmem:[#allocation5 + $0x38] sm:$0xff]  }
  0xee   :  { %v1104_v44 = vsel %vm234_vm5, 1.0, %v1565_v36  ;;  %1247 = vmatprep.subr.bf16.mxu1 %v1457_v16 }
  0xef   :  { %v277_v24 = vmul.f32 0.125, %v273_v20  ;;  %v246_v52 = vadd.f32 %v1104_v44, %v218_v46 }
  0xf1   :  { %v201_v27 = vpop.permute.xlu1 %200  ;;  %1229 = vmatprep.mubr.f32.mxu0 %v277_v24  ;;  %1248 = vmatpush3.bf16.msra.mxu1 %v1457_v16  ;;  %v1777_v24 = vshrl.u32 %v51_v57, 7  ;;  %v1111_v57 = vld [vmem:[%s1845_s3] ss:$0 sm:$0xff]  ;;  %s1569_s3 = smov [#allocation7]  }
  0xf2   :  { %vm207_vm10 = vcmp.eq.s32.totalorder %v1696_v60, %v201_v27  ;;  %1249 = vmatprep.subr.bf16.mxu1 %v1458_v17  ;;  %s1066_s24 = sshll.u32 %s1569_s3, 4  ;;  %s1067_s24 = int_to_ptr.vmem [resolvable:$true] %s1066_s24 }
  0xf3   :  { %v1101_v62 = vsel %vm207_vm10, 1.0, %v1565_v36  ;;  %v525_v25 = vmul.u32 4, %v1777_v24  ;;  %vm622_vm5 = vcmp.lt.s32.totalorder %v1777_v24, 4  ;;  %s1523_s27 = scalar_lea.vmem %s1067_s24, 256  ;;  %p1528_p3 = scmp.lt.s32.totalorder %s1067_s24, %s1067_s24 }
  0xf4   :  { %v219_v3 = vadd.f32 %v1101_v62, %v191_v63  ;;  %p1524_p2 = scmp.ne.s32.totalorder %s1067_s24, %s1523_s27  ;;  %p1529_p4 = scmp.lt.s32.totalorder %s1523_s27, %s1523_s27 }
  0xf5   :  { %v204_v35 = vpop.permute.xlu1 %203  ;;  %1250 = vmatpush3.bf16.msra.mxu1 %v1458_v17  ;;  %v557_v26 = vadd.s32 4, %v525_v25  ;;  %vm541_vm0 = vcmp.ge.s32.totalorder %v1696_v60, %v525_v25 }
  0xf6   :  { %vm208_vm9 = vcmp.eq.s32.totalorder %v1696_v60, %v204_v35  ;;  %v247_v9 = vadd.f32 %v1105_v5, %v219_v3  ;;  %p1530_p5 = por %p1529_p4, %p1528_p3 }
  0xf7   :  { %v1102_v56 = vsel %vm208_vm9, 1.0, %v1565_v36  ;;  %vm573_vm1 = vcmp.lt.s32.totalorder %v1696_v60, %v557_v26 }
  0xf8   :  { %v220_v2 = vadd.f32 %v1102_v56, %v192_v61  ;;  %vm589_vm2 = vmand %vm541_vm0, %vm573_vm1  ;;  %p1531_p6 = pnand %p1530_p5, %p1524_p2 }
  0xf9   :  { %vm606_vm4 = vmand %vm589_vm2, %vm605_vm3 }
  0xfa   :  { %v254_v50 = vpop.permute.xlu1 %253  ;;  %vm638_vm6 = vmand %vm606_vm4, %vm622_vm5 }
  0xfb   :  { %vm262_vm11 = vcmp.eq.s32.totalorder %v1696_v60, %v254_v50  ;;  %v654_v27 = vsel %vm638_vm6, 0.25, %v1565_v36 }
  0xfc   :  { %v1108_v54 = vsel %vm262_vm11, 1.0, %v1565_v36 }
  0xfd   :  { %v274_v58 = vadd.f32 %v1108_v54, %v246_v52 }
  0xff   :  { %v278_v0 = vmul.f32 0.125, %v274_v58  ;;  %v232_v1 = vpop.permute.xlu1 %231 }
 0x100   :  { %vm236_vm13 = vcmp.eq.s32.totalorder %v1696_v60, %v232_v1 }
 0x101   :  { %v1106_v4 = vsel %vm236_vm13, 1.0, %v1565_v36  ;;  %1230 = vmatmul.mubr.f32.vlgmr.msra.gmra.mrb[0].mxu0 %v278_v0 }
 0x102   :  { %v248_v6 = vadd.f32 %v1106_v4, %v220_v2 }
 0x104   :  { %v257_v8 = vpop.permute.xlu1 %256  ;;  %v276_v10 = vadd.f32 %v1110_v7, %v248_v6 }
 0x105   :  { %vm263_vm15 = vcmp.eq.s32.totalorder %v1696_v60, %v257_v8 }
 0x106   :  { %v1109_v11 = vsel %vm263_vm15, 1.0, %v1565_v36  ;;  %v280_v14 = vmul.f32 0.125, %v276_v10 }
 0x107   :  { %v275_v12 = vadd.f32 %v1109_v11, %v247_v9 }
 0x109   :  { %v279_v13 = vmul.f32 0.125, %v275_v12 }
 0x10b   :  { %1232 = vmatprep.mubr.f32.mxu0 %v279_v13 }
 0x10c   :  { %1233 = vmatmul.mubr.f32.gmra.mrb[2].mxu0 %v280_v14 }
 0x10d   :  { %1338 = vmatprep.mubr.msk.bf16.mxu0 %vm1567_vm8, %v1565_v36 }
 0x1d4   :  { %v1231_v18 = vpop.f32.mrb[0].mxu0 }
 0x1d5   :  { %v363_v19 = vpop.f32.mrb[1].mxu0 }
 0x1d6   :  { %v382_v20 = vpack.c.bf16 %v1231_v18, %v363_v19 }
 0x1d8   :  { %1251 = vmatprep.mubr.bf16.mxu1 %v382_v20 }
 0x1df   :  { %v1234_v21 = vpop.f32.mrb[2].mxu0 }
 0x1e0   :  { %v373_v22 = vpop.f32.mrb[3].mxu0 }
 0x1e1   :  { %v383_v23 = vpack.c.bf16 %v1234_v21, %v373_v22 }
 0x1e3   :  { %1252 = vmatmul.mubr.bf16.vlgmr.msra.gmra.mrb[0].mxu1 %v383_v23 }
 0x1e4   :  { %1263 = vmatprep.mubr.msk.f32.mxu1 %vm670_vm7, %v654_v27 }
 0x2b6   :  { %v1253_v28 = vpop.f32.mrb[0].mxu1 }
 0x2b7   :  { %v498_v29 = vadd.f32 %v1253_v28, %v1111_v57  ;;  %v489_v30 = vpop.f32.mrb[1].mxu1 }
 0x2b8   :  { %v490_v31 = vadd.f32 %v1111_v57, %v489_v30  ;;  %v1254_v32 = vpop.f32.mrb[2].mxu1 }
 0x2b9   :  { %1459 = vtanh.f32 %v498_v29  ;;  %v501_v33 = vadd.f32 %v1254_v32, %v1111_v57  ;;  %v492_v34 = vpop.f32.mrb[3].mxu1  ;;  %v1568_v32 = vmov 1.0  }
 0x2ba   :  { %1461 = vtanh.f32 %v490_v31  ;;  %v493_v35 = vadd.f32 %v1111_v57, %v492_v34 }
 0x2bb   :  { %1463 = vtanh.f32 %v501_v33  ;;  %v1008_v33 = vsub.s32 0, %v1777_v24 }
 0x2bc   :  { %1465 = vtanh.f32 %v493_v35 }
 0x2c3   :  { %v1460_v37 = vpop.eup %1459 }
 0x2c4   :  { %v1462_v38 = vpop.eup %1461  ;;  %v864_v39 = vmul.f32 %v1460_v37, %v1460_v37 }
 0x2c5   :  { %v1464_v40 = vpop.eup %1463 }
 0x2c6   :  { %v1466_v41 = vpop.eup %1465  ;;  %866 = vadd.xlane.f32.xlu1 %v864_v39  ;;  %v865_v42 = vmul.f32 %v1464_v40, %v1464_v40  ;;  %v1788_v43 = vpack.c.bf16 %v1464_v40, %v1460_v37 }
 0x2c7   :  { %v1374_v44 = vpack.c.bf16 %v1466_v41, %v1462_v38 }
 0x2c8   :  { %868 = vadd.xlane.f32.xlu0 %v865_v42 }
 0x2c9   :  { %1375 = vmatprep.subr.bf16.mxu1 %v1374_v44 }
 0x2ca   :  { %1377 = vmatpush3.bf16.msra.mxu1 %v1374_v44 }
 0x2cb   :  { %1379 = vmatprep.subr.bf16.mxu1 %v1788_v43 }
 0x2ce   :  { %1381 = vmatpush3.bf16.msra.mxu1 %v1788_v43 }
 0x2cf   :  { %1382 = vmatprep.subr.bf16.mxu1 %v1566_v45 }
 0x2d1   :  { %1264 = vmatmul.mubr.f32.vlgmr.msra.gmra.mrb[4].mxu1 %v1565_v36 }
 0x2d2   :  { %1266 = vmatprep.mubr.f32.mxu1 %v1565_v36 }
 0x2d5   :  { %1267 = vmatmul.mubr.f32.gmra.mrb[6].mxu1 %v1565_v36 }
 0x2d6   :  { %1269 = vmatprep.mubr.f32.mxu1 %v1565_v36 }
 0x2d9   :  { %1270 = vmatmul.mubr.f32.gmra.mrb[8].mxu1 %v1565_v36 }
 0x2da   :  { %1272 = vmatprep.mubr.f32.mxu1 %v1565_v36 }
 0x2dd   :  { %1273 = vmatmul.mubr.f32.gmra.mrb[10].mxu1 %v1565_v36 }
 0x2de   :  { %1275 = vmatprep.mubr.f32.mxu1 %v1565_v36 }
 0x2e1   :  { %1276 = vmatmul.mubr.f32.gmra.mrb[12].mxu1 %v1565_v36 }
 0x2e2   :  { %1278 = vmatprep.mubr.f32.mxu1 %v1565_v36 }
 0x2e5   :  { %1279 = vmatmul.mubr.f32.gmra.mrb[14].mxu1 %v1565_v36 }
 0x2e6   :  { %1281 = vmatprep.mubr.f32.mxu1 %v1565_v36 }
 0x2e9   :  { %1282 = vmatmul.mubr.f32.gmra.mrb[16].mxu1 %v1565_v36 }
 0x2ea   :  { %1284 = vmatprep.mubr.f32.mxu1 %v1565_v36 }
 0x2ed   :  { %1285 = vmatmul.mubr.f32.gmra.mrb[18].mxu1 %v1565_v36 }
 0x2ee   :  { %1319 = vmatprep.mubr.msk.f32.mxu1 %vm1567_vm8, %v1565_v36 }
 0x353   :  { %v867_v42 = vpop.xlane.xlu1 %866 }
 0x3a4   :  { %v1265_v46 = vpop.f32.mrb[4].mxu1 }
 0x3a5   :  { %v871_v47 = vmul.f32 %v1265_v46, %v1265_v46  ;;  %v785_v48 = vpop.f32.mrb[5].mxu1 }
 0x3a6   :  { %v870_v49 = vmul.f32 %v785_v48, %v785_v48  ;;  %v957_v50 = vpack.c.bf16 %v1265_v46, %v785_v48 }
 0x3a8   :  { %v1383_v51 = vpack.c.bf16 %v871_v47, %v870_v49  ;;  %1323 = vmatpush3.bf16.xpose.msra.mxu0 %v957_v50  ;;  %v1268_v52 = vpop.f32.mrb[6].mxu1 }
 0x3a9   :  { %v873_v53 = vmul.f32 %v1268_v52, %v1268_v52  ;;  %v795_v54 = vpop.f32.mrb[7].mxu1  ;;  %1324 = vmatprep.subr.bf16.mxu0 %v1565_v36 }
 0x3aa   :  { %1384 = vmatpush3.bf16.xpose.msra.mxu1 %v1383_v51  ;;  %v872_v55 = vmul.f32 %v795_v54, %v795_v54  ;;  %v958_v56 = vpack.c.bf16 %v1268_v52, %v795_v54 }
 0x3ab   :  { %1385 = vmatprep.subr.bf16.mxu1 %v1566_v45 }
 0x3ac   :  { %v1386_v58 = vpack.c.bf16 %v873_v53, %v872_v55  ;;  %v1271_v59 = vpop.f32.mrb[8].mxu1 }
 0x3ad   :  { %v875_v61 = vmul.f32 %v1271_v59, %v1271_v59  ;;  %v805_v62 = vpop.f32.mrb[9].mxu1 }
 0x3ae   :  { %v874_v63 = vmul.f32 %v805_v62, %v805_v62  ;;  %v959_v0 = vpack.c.bf16 %v1271_v59, %v805_v62 }
 0x3b0   :  { %1325 = vmatpush3.bf16.xpose.msra.mxu0 %v958_v56  ;;  %v1389_v1 = vpack.c.bf16 %v875_v61, %v874_v63  ;;  %v1274_v2 = vpop.f32.mrb[10].mxu1 }
 0x3b1   :  { %1326 = vmatprep.subr.bf16.mxu0 %v1565_v36  ;;  %v877_v3 = vmul.f32 %v1274_v2, %v1274_v2  ;;  %v815_v4 = vpop.f32.mrb[11].mxu1 }
 0x3b2   :  { %1387 = vmatpush3.bf16.xpose.msra.mxu1 %v1386_v58  ;;  %v876_v5 = vmul.f32 %v815_v4, %v815_v4  ;;  %v960_v6 = vpack.c.bf16 %v1274_v2, %v815_v4 }
 0x3b3   :  { %1388 = vmatprep.subr.bf16.mxu1 %v1566_v45 }
 0x3b4   :  { %v1392_v7 = vpack.c.bf16 %v877_v3, %v876_v5  ;;  %v1277_v8 = vpop.f32.mrb[12].mxu1 }
 0x3b5   :  { %v879_v9 = vmul.f32 %v1277_v8, %v1277_v8  ;;  %v825_v10 = vpop.f32.mrb[13].mxu1 }
 0x3b6   :  { %v878_v11 = vmul.f32 %v825_v10, %v825_v10  ;;  %v961_v12 = vpack.c.bf16 %v1277_v8, %v825_v10 }
 0x3b8   :  { %1327 = vmatpush3.bf16.xpose.msra.mxu0 %v959_v0  ;;  %v1395_v13 = vpack.c.bf16 %v879_v9, %v878_v11  ;;  %v1280_v14 = vpop.f32.mrb[14].mxu1 }
 0x3b9   :  { %1328 = vmatprep.subr.bf16.mxu0 %v1565_v36  ;;  %v881_v15 = vmul.f32 %v1280_v14, %v1280_v14  ;;  %v835_v16 = vpop.f32.mrb[15].mxu1 }
 0x3ba   :  { %1390 = vmatpush3.bf16.xpose.msra.mxu1 %v1389_v1  ;;  %v880_v17 = vmul.f32 %v835_v16, %v835_v16  ;;  %v962_v18 = vpack.c.bf16 %v1280_v14, %v835_v16 }
 0x3bb   :  { %1391 = vmatprep.subr.bf16.mxu1 %v1566_v45 }
 0x3bc   :  { %v1398_v19 = vpack.c.bf16 %v881_v15, %v880_v17  ;;  %v1283_v20 = vpop.f32.mrb[16].mxu1 }
 0x3bd   :  { %v883_v21 = vmul.f32 %v1283_v20, %v1283_v20  ;;  %v845_v22 = vpop.f32.mrb[17].mxu1 }
 0x3be   :  { %v882_v23 = vmul.f32 %v845_v22, %v845_v22  ;;  %v963_v25 = vpack.c.bf16 %v1283_v20, %v845_v22 }
 0x3c0   :  { %1329 = vmatpush3.bf16.xpose.msra.mxu0 %v960_v6  ;;  %v1401_v26 = vpack.c.bf16 %v883_v21, %v882_v23  ;;  %v1286_v27 = vpop.f32.mrb[18].mxu1 }
 0x3c1   :  { %1330 = vmatprep.subr.bf16.mxu0 %v1565_v36  ;;  %v885_v57 = vmul.f32 %v1286_v27, %v1286_v27  ;;  %v855_v28 = vpop.f32.mrb[19].mxu1 }
 0x3c2   :  { %1393 = vmatpush3.bf16.xpose.msra.mxu1 %v1392_v7  ;;  %v884_v29 = vmul.f32 %v855_v28, %v855_v28  ;;  %v964_v30 = vpack.c.bf16 %v1286_v27, %v855_v28 }
 0x3c3   :  { %1394 = vmatprep.subr.bf16.mxu1 %v1566_v45 }
 0x3c4   :  { %v1404_v31 = vpack.c.bf16 %v885_v57, %v884_v29 }
 0x3c8   :  { %1331 = vmatpush3.bf16.xpose.msra.mxu0 %v961_v12 }
 0x3c9   :  { %1332 = vmatprep.subr.bf16.mxu0 %v1565_v36 }
 0x3ca   :  { %1396 = vmatpush3.bf16.xpose.msra.mxu1 %v1395_v13 }
 0x3cb   :  { %1397 = vmatprep.subr.bf16.mxu1 %v1566_v45 }
 0x3d0   :  { %1333 = vmatpush3.bf16.xpose.msra.mxu0 %v962_v18 }
 0x3d1   :  { %1334 = vmatprep.subr.bf16.mxu0 %v1565_v36 }
 0x3d2   :  { %1399 = vmatpush3.bf16.xpose.msra.mxu1 %v1398_v19 }
 0x3d3   :  { %1400 = vmatprep.subr.bf16.mxu1 %v1566_v45 }
 0x3d8   :  { %1335 = vmatpush3.bf16.xpose.msra.mxu0 %v963_v25 }
 0x3d9   :  { %1336 = vmatprep.subr.bf16.mxu0 %v1565_v36  ;;  %v869_v36 = vpop.xlane.xlu0 %868 }
 0x3da   :  { %1402 = vmatpush3.bf16.xpose.msra.mxu1 %v1401_v26 }
 0x3db   :  { %1403 = vmatprep.subr.bf16.mxu1 %v1566_v45 }
 0x3e0   :  { %1337 = vmatpush3.bf16.xpose.msra.mxu0 %v964_v30 }
 0x3e2   :  { %1405 = vmatpush3.bf16.xpose.msra.mxu1 %v1404_v31 }
 0x3e7   :  { %1339 = vmatmul.mubr.bf16.vlgmr.msra.gmra.mrb[4].mxu0 %v1788_v43 }
 0x3e9   :  { %1320 = vmatmul.mubr.f32.vlgmr.msra.gmra.mrb[20].mxu1 %v1568_v32 }
 0x4ba   :  { %v999_v34 = vpop.f32.mrb[4].mxu0 }
 0x4bb   :  { %v1340_v35 = vpop.f32.mrb[5].mxu0  ;;  %v1012_v44 = vmul.f32 2.0, %v999_v34 }
 0x4bc   :  { %v952_v37 = vpop.f32.mrb[20].mxu1  ;;  %v1002_v38 = vpop.f32.mrb[6].mxu0 }
 0x4bd   :  { %v1009_v39 = vrot.slane %v952_v37, %v1008_v33  ;;  %v1321_v40 = vpop.f32.mrb[21].mxu1  ;;  %v1341_v41 = vpop.f32.mrb[7].mxu0  ;;  %v1013_v47 = vmul.f32 2.0, %v1002_v38 }
 0x4bf   :  { %v1010_v46 = vadd.f32 %v1009_v39, %v867_v42  ;;  %v1011_v45 = vadd.f32 %v1009_v39, %v869_v36 }
 0x4c1   :  { %v1014_v48 = vsub.f32 %v1010_v46, %v1012_v44  ;;  %v1015_v49 = vsub.f32 %v1011_v45, %v1013_v47 }
 0x4c3   :  { %v1016_v43 = vmax.f32 %v1014_v48, 0.0  ;;  %v1017_v50 = vmax.f32 %v1015_v49, 0.0 }
 0x4c5   :  { %1467 = vrsqrt.f32 %v1017_v50  ;;  %vm1027_vm9 = vcmp.eq.f32.partialorder %v1017_v50, inf  ;;  %v1030_v53 = vand.u32 2147483648, %v1017_v50  ;;  %vm1029_vm10 = vcmp.eq.f32.partialorder %v1017_v50, 0.0 }
 0x4c6   :  { %1469 = vrsqrt.f32 %v1016_v43  ;;  %vm1020_vm11 = vcmp.eq.f32.partialorder %v1016_v43, inf  ;;  %v1023_v56 = vand.u32 2147483648, %v1016_v43  ;;  %vm1022_vm13 = vcmp.eq.f32.partialorder %v1016_v43, 0.0 }
 0x4cf   :  { %v1468_v24 = vpop.eup %1467 }
 0x4d0   :  { %v1470_v51 = vpop.eup %1469  ;;  %v1026_v52 = vmul.f32 %v1468_v24, %v1017_v50 }
 0x4d1   :  { %v1019_v54 = vmul.f32 %v1470_v51, %v1016_v43 }
 0x4d2   :  { %v1028_v55 = vsel %vm1027_vm9, %v1017_v50, %v1026_v52 }
 0x4d3   :  { %v1031_v58 = vsel %vm1029_vm10, %v1030_v53, %v1028_v55  ;;  %v1021_v59 = vsel %vm1020_vm11, %v1016_v43, %v1019_v54 }
 0x4d4   :  { %v1034_v61 = vsub.f32 0.0, %v1031_v58  ;;  %v1024_v62 = vsel %vm1022_vm13, %v1023_v56, %v1021_v59 }
 0x4d5   :  { %v1033_v63 = vsub.f32 0.0, %v1024_v62 }
 0x4d6   :  { %v1036_v0 = vsel %vm1032_vm12, %v1034_v61, -inf }
 0x4d7   :  { %1039 = vmax.xlane.f32.xlu0 %v1036_v0  ;;  %v1035_v1 = vsel %vm1032_vm12, %v1033_v63, -inf }
 0x4d8   :  { %1037 = vmax.xlane.f32.xlu1 %v1035_v1 }
 0x564   :  { %v1040_v2 = vpop.xlane.xlu0 %1039 }
 0x565   :  { %v1042_v3 = vsub.f32 %v1036_v0, %v1040_v2  ;;  %v1038_v4 = vpop.xlane.xlu1 %1037 }
 0x566   :  { %v1041_v5 = vsub.f32 %v1035_v1, %v1038_v4 }
 0x567   :  { %v1045_v6 = vmul.f32 1.442695, %v1042_v3 }
 0x568   :  { %v1043_v7 = vmul.f32 1.442695, %v1041_v5 }
 0x569   :  { %1471 = vpow2.f32 %v1045_v6 }
 0x56a   :  { %1473 = vpow2.f32 %v1043_v7 }
 0x573   :  { %v1472_v8 = vpop.eup %1471 }
 0x574   :  { %v1474_v9 = vpop.eup %1473  ;;  %1049 = vadd.xlane.f32.xlu0 %v1472_v8 }
 0x575   :  { %1047 = vadd.xlane.f32.xlu1 %v1474_v9 }
 0x601   :  { %v1050_v60 = vpop.xlane.xlu0 %1049 }
 0x602   :  { %1475 = vlog2.f32 %v1050_v60  ;;  %v1048_v10 = vpop.xlane.xlu1 %1047 }
 0x603   :  { %1477 = vlog2.f32 %v1048_v10 }
 0x60c   :  { %v1476_v11 = vpop.eup %1475 }
 0x60d   :  { %v1478_v12 = vpop.eup %1477  ;;  %v1054_v13 = vmul.f32 0.6931472, %v1476_v11 }
 0x60e   :  { %v1052_v14 = vmul.f32 0.6931472, %v1478_v12 }
 0x60f   :  { %v1056_v15 = vadd.f32 %v1054_v13, %v1040_v2 }
 0x610   :  { %v1055_v16 = vadd.f32 %v1052_v14, %v1038_v4 }
 0x611   :  { %v1058_v17 = vsub.f32 %v1036_v0, %v1056_v15 }
 0x612   :  { %v1057_v18 = vsub.f32 %v1035_v1, %v1055_v16 }
 0x613   :  { %1060 = vst [vmem:[#allocation7 + $0x8] sm:$0xff] %v1058_v17 }
 0x614   :  { %1059 = vst [vmem:[#allocation7] sm:$0xff] %v1057_v18 }
 0x615   :  { %1534 = shalt.err (!%p1531_p6)
}
 0x616   :  { %s1535_s30 = scalar_lea.hbm %s1846_s4, 256 }
 0x617   :  { %p1536_p7 = scmp.ne.s32.totalorder %s1846_s4, %s1535_s30  ;;  %p1539_p8 = scmp.lt.u32.totalorder %s1535_s30, %s1846_s4 }
 0x619   :  { %p1541_p9 = pnand %p1539_p8, %p1536_p7 }
 0x61b   :  { %1544 = shalt.err (!%p1541_p9)
}
 0x61c   :  { %1072 = dma.vmem_to_hbm [thread:$0]  %s1067_s24, 256, %s1846_s4, [#allocation4], %s1552_s25, %s1552_s25, %s1553_s26  }
 0x61d   :  { %1549 = dma.done.wait [#allocation4], 256  }
 0x61e   :  { %1550 = vsyncadd [#allocation4], 4294967040 }
 0x61f   :  { %1076 = vsyncpa [#allocation3], 1 }
 0x620   :  { %1077 = vsyncpa [#allocation6], 1 }
 0x621   :  { %1078 = vsyncpa [#allocation4], 1 }

</bundles_post_ra>
